<compile_context>
chip_gen: v6e
topology: v6e:2x2x1
jax: 0.10.0
libtpu: 0.0.40
codegen_flags: <defaults>
</compile_context>

<pallas_src>
import jax
import jax.numpy as jnp
from jax.experimental import pallas as pl
from jax.experimental.pallas import tpu as pltpu


def _round_up(a, b):
    return ((a + b - 1) // b) * b


def _maxpool_kernel(x_ref, o_ref):
    # x_ref: (tm, 4, th, 4*W)  -- dim 1 is the D window, lanes hold 4 H-rows.
    # o_ref: (tm, th, W)
    w = o_ref.shape[-1]
    # D-window: unrolled maximum tree over the leading window axis (pure VPU).
    d01 = jnp.maximum(x_ref[:, 0], x_ref[:, 1])
    d23 = jnp.maximum(x_ref[:, 2], x_ref[:, 3])
    xd = jnp.maximum(d01, d23)                       # (tm, th, 4*W)
    # H-window: max tree over four W-wide lane slices (pure VPU when W%128==0).
    h01 = jnp.maximum(xd[..., 0:w], xd[..., w:2 * w])
    h23 = jnp.maximum(xd[..., 2 * w:3 * w], xd[..., 3 * w:4 * w])
    o_ref[...] = jnp.maximum(h01, h23)               # (tm, th, W)


def soma_forward(x, *, block_budget_bytes=8 * 1024 * 1024,
                 min_block_bytes=2 * 1024 * 1024,
                 target_grid_steps=8):
    """MaxPool3d((4, 4, 1), stride=(4, 4, 1)) on NCDHW input via a Pallas kernel."""
    N, C, D, H, W = x.shape
    Do, Ho = D // 4, H // 4

    # PyTorch MaxPool3d raises for D<4 or H<4 ("output size too small"); we
    # return an empty tensor instead of faking data.
    if Do == 0 or Ho == 0 or N * C == 0 or W == 0:
        return jnp.zeros((N, C, Do, Ho, W), x.dtype)

    # Floor behaviour: crop ragged D/H tails.  This is an extra XLA copy only
    # when D or H is not a multiple of 4; the common case pays nothing.
    if D != Do * 4 or H != Ho * 4:
        x = x[:, :, : Do * 4, : Ho * 4, :]

    Mo = N * C * Do
    W4 = 4 * W
    # Free (row-major-compatible) reshape: no transpose, no extra HBM pass.
    xr = x.reshape(Mo, 4, Ho, W4)

    itemsize = jnp.dtype(x.dtype).itemsize
    sub = 8 * max(1, 4 // itemsize)       # sublane tile rows (f32:8, bf16:16, i8:32)
    LANE = 128

    def in_block_bytes(tm, th):           # real (padded) VMEM footprint of one block
        return tm * 4 * _round_up(th, sub) * _round_up(W4, LANE) * itemsize

    def out_block_bytes(tm, th):
        return tm * _round_up(th, sub) * _round_up(W, LANE) * itemsize

    per_m = in_block_bytes(1, Ho) + out_block_bytes(1, Ho)
    if per_m <= block_budget_bytes:
        # Common case: take full pooled-H rows, block only over Mo.
        th = Ho
        tm_budget = max(1, block_budget_bytes // per_m)
        tm_steps = pl.cdiv(Mo, target_grid_steps)          # ~8 grid steps target
        tm_minblk = max(1, min_block_bytes // per_m)        # keep blocks >= ~2 MiB
        tm = min(tm_budget, max(tm_steps, tm_minblk), Mo)
        if Mo >= 2:
            tm = min(tm, pl.cdiv(Mo, 2))                    # always >= 2 steps (v7x: 2 TCs)
        tm = max(1, tm)
    else:
        # One pooled-D row is too big for the budget: tm = 1 and block the
        # pooled-H axis into sublane-aligned chunks.
        tm = 1
        if Ho <= sub:
            th = Ho
        else:
            per_sub = in_block_bytes(1, sub) + out_block_bytes(1, sub)
            th = max(1, block_budget_bytes // per_sub) * sub
            if th >= Ho:
                th = Ho
        # NOTE: for extremely large W (4*W*itemsize >~ 2 MiB) a W-blocking grid
        # axis would also be needed; not implemented (rare).

    grid = (pl.cdiv(Mo, tm), pl.cdiv(Ho, th))

    out_elems = Mo * Ho * W
    cost = pl.CostEstimate(
        flops=15 * out_elems,                               # 15 compares / out elem
        transcendentals=0,
        bytes_accessed=(16 + 1) * out_elems * itemsize,     # read 16x, write 1x
    )

    out = pl.pallas_call(
        _maxpool_kernel,
        out_shape=jax.ShapeDtypeStruct((Mo, Ho, W), x.dtype),
        grid_spec=pltpu.PrefetchScalarGridSpec(
            num_scalar_prefetch=0,
            grid=grid,
            in_specs=[
                pl.BlockSpec((tm, 4, th, W4), lambda i, j: (i, 0, j, 0)),
            ],
            out_specs=pl.BlockSpec((tm, th, W), lambda i, j: (i, j, 0)),
        ),
        compiler_params=pltpu.CompilerParams(
            dimension_semantics=("parallel", "parallel"),
            vmem_limit_bytes=32 * 1024 * 1024,
        ),
        cost_estimate=cost,
    )(xr)

    return out.reshape(N, C, Do, Ho, W)


def _reference(x):
    N, C, D, H, W = x.shape
    Do, Ho = D // 4, H // 4
    xr = x[:, :, : Do * 4, : Ho * 4, :].reshape(N, C, Do, 4, Ho, 4, W)
    return xr.max(axis=(3, 5))


if __name__ == "__main__":
    key = jax.random.PRNGKey(0)
    k1, k2, k3 = jax.random.split(key, 3)

    # 1) Main case: NCDHW, lane-dense W, single pooled-H block.
    x1 = jax.random.normal(k1, (2, 4, 16, 16, 128), dtype=jnp.float32)
    y1 = jax.block_until_ready(soma_forward(x1))
    assert y1.shape == (2, 4, 4, 4, 128), y1.shape
    assert jnp.array_equal(y1, _reference(x1)), "mismatch vs reference (case 1)"

    # 2) Force the pooled-H blocking path (2-D grid) with a small VMEM budget.
    x2 = jax.random.normal(k2, (1, 2, 8, 64, 128), dtype=jnp.float32)
    y2 = jax.block_until_ready(
        soma_forward(x2, block_budget_bytes=128 * 1024, min_block_bytes=64 * 1024))
    assert y2.shape == (1, 2, 2, 16, 128), y2.shape
    assert jnp.array_equal(y2, _reference(x2)), "mismatch vs reference (case 2)"

    # 3) Ragged D/H (floor crop) + bf16 dtype.
    x3 = jax.random.normal(k3, (1, 2, 18, 17, 128), dtype=jnp.bfloat16)
    y3 = jax.block_until_ready(soma_forward(x3))
    assert y3.shape == (1, 2, 4, 4, 128), y3.shape
    assert jnp.array_equal(y3, _reference(x3)), "mismatch vs reference (case 3)"

    print("KERNEL_OK")
</pallas_src>

<mosaic_0001>
module attributes {stable_mosaic.version = 11 : i64} {
  func.func @_maxpool_kernel(%arg0: i32, %arg1: i32, %arg2: memref<16x4x4x512xf32, #tpu.memory_space<vmem>>, %arg3: memref<16x4x128xf32, #tpu.memory_space<vmem>>) attributes {dimension_semantics = [#tpu.dimension_semantics<parallel>, #tpu.dimension_semantics<parallel>], iteration_bounds = array<i64: 2, 1>, scalar_prefetch = 0 : i64, scratch_operands = 0 : i64, tpu.core_type = #tpu.core_type<tc>, window_params = [{transform_indices = @transform_0, window_bounds = array<i64: 16, 4, 4, 512>}, {transform_indices = @transform_1, window_bounds = array<i64: 16, 4, 128>}]} {
    %c0 = arith.constant 0 : index
    %c0_0 = arith.constant 0 : index
    %c0_1 = arith.constant 0 : index
    %c0_2 = arith.constant 0 : index
    %0 = vector.load %arg2[%c0, %c0_0, %c0_1, %c0_2] : memref<16x4x4x512xf32, #tpu.memory_space<vmem>>, vector<16x1x4x512xf32>
    %1 = vector.shape_cast %0 : vector<16x1x4x512xf32> to vector<16x4x512xf32>
    %c0_3 = arith.constant 0 : index
    %c1 = arith.constant 1 : index
    %c0_4 = arith.constant 0 : index
    %c0_5 = arith.constant 0 : index
    %2 = vector.load %arg2[%c0_3, %c1, %c0_4, %c0_5] : memref<16x4x4x512xf32, #tpu.memory_space<vmem>>, vector<16x1x4x512xf32>
    %3 = vector.shape_cast %2 : vector<16x1x4x512xf32> to vector<16x4x512xf32>
    %4 = arith.maximumf %1, %3 : vector<16x4x512xf32>
    %c0_6 = arith.constant 0 : index
    %c2 = arith.constant 2 : index
    %c0_7 = arith.constant 0 : index
    %c0_8 = arith.constant 0 : index
    %5 = vector.load %arg2[%c0_6, %c2, %c0_7, %c0_8] : memref<16x4x4x512xf32, #tpu.memory_space<vmem>>, vector<16x1x4x512xf32>
    %6 = vector.shape_cast %5 : vector<16x1x4x512xf32> to vector<16x4x512xf32>
    %c0_9 = arith.constant 0 : index
    %c3 = arith.constant 3 : index
    %c0_10 = arith.constant 0 : index
    %c0_11 = arith.constant 0 : index
    %7 = vector.load %arg2[%c0_9, %c3, %c0_10, %c0_11] : memref<16x4x4x512xf32, #tpu.memory_space<vmem>>, vector<16x1x4x512xf32>
    %8 = vector.shape_cast %7 : vector<16x1x4x512xf32> to vector<16x4x512xf32>
    %9 = arith.maximumf %6, %8 : vector<16x4x512xf32>
    %10 = arith.maximumf %4, %9 : vector<16x4x512xf32>
    %11 = vector.extract_strided_slice %10 {offsets = [0, 0, 0], sizes = [16, 4, 128], strides = [1, 1, 1]} : vector<16x4x512xf32> to vector<16x4x128xf32>
    %12 = vector.extract_strided_slice %10 {offsets = [0, 0, 128], sizes = [16, 4, 128], strides = [1, 1, 1]} : vector<16x4x512xf32> to vector<16x4x128xf32>
    %13 = arith.maximumf %11, %12 : vector<16x4x128xf32>
    %14 = vector.extract_strided_slice %10 {offsets = [0, 0, 256], sizes = [16, 4, 128], strides = [1, 1, 1]} : vector<16x4x512xf32> to vector<16x4x128xf32>
    %15 = vector.extract_strided_slice %10 {offsets = [0, 0, 384], sizes = [16, 4, 128], strides = [1, 1, 1]} : vector<16x4x512xf32> to vector<16x4x128xf32>
    %16 = arith.maximumf %14, %15 : vector<16x4x128xf32>
    %17 = arith.maximumf %13, %16 : vector<16x4x128xf32>
    %c0_12 = arith.constant 0 : index
    %c0_13 = arith.constant 0 : index
    %c0_14 = arith.constant 0 : index
    %18 = vector.load %arg3[%c0_12, %c0_13, %c0_14] : memref<16x4x128xf32, #tpu.memory_space<vmem>>, vector<16x4x128xf32>
    tpu.vector_store %arg3[%c0_12, %c0_13, %c0_14], %17 {strides = array<i32>} : memref<16x4x128xf32, #tpu.memory_space<vmem>>, vector<16x4x128xf32>,
    return
  }
  func.func @transform_0(%arg0: i32, %arg1: i32) -> (i32, i32, i32, i32) {
    %c0_i32 = arith.constant 0 : i32
    %c0_i32_0 = arith.constant 0 : i32
    %c0_i32_1 = arith.constant 0 : i32
    return %arg0, %c0_i32, %arg1, %c0_i32_0 : i32, i32, i32, i32
  }
  func.func @transform_1(%arg0: i32, %arg1: i32) -> (i32, i32, i32) {
    %c0_i32 = arith.constant 0 : i32
    %c0_i32_0 = arith.constant 0 : i32
    return %arg0, %arg1, %c0_i32 : i32, i32, i32
  }
}

</mosaic_0001>

<bundles_post_ra>
// kernel: tpu_custom_call.1
= control target key start
LH: loop header
LB: loop body
LE: loop exit
PB: predicated region body
PF: predicated region fallthrough
CT: control target
= control target key end

     0   :  { %6 = vsyncpa [#allocation3], 0  ;;  %s1249_s0 = inlined_call_operand.hbm [shape: f32[32,4,4,512], index: 0, kind: input, shape index: {}]   ;;  %s1250_s1 = inlined_call_operand.hbm [shape: f32[32,4,128], index: 1, kind: output, shape index: {}]  }
   0x1   :  { %8 = vsyncpa [#allocation3 + $0x1], 0 }
   0x2   :  { %9 = vsyncpa [#allocation4], 0 }
   0x3   :  { %11 = vsyncpa [#allocation4 + $0x1], 0  ;;  %s951_s6 = smov 0   ;;  %s953_s7 = smov 0  }
   0x4   :  { %s955_s8 = smov 0   ;;  %s957_s9 = smov 0  }
   0x5   :  { %s959_s10 = smov 0   ;;  %s961_s11 = smov 0  }
   0x6 LB: > { %s644_s12 = sadd.s32 4294967295, %s933_s11   ;;  %s645_s13 = sadd.s32 4294967294, %s933_s11   ;;  %s933_s11 = sphi %s961_s11, %s17_s11   ;;  %s929_s10 = sphi %s959_s10, %s1261_s10   ;;  %s925_s9 = sphi %s957_s9, %s1260_s9   ;;  %s921_s8 = sphi %s955_s8, %s1259_s8   ;;  %s917_s7 = sphi %s953_s7, %s1258_s7   ;;  %s913_s6 = sphi %s951_s6, %s1257_s6  }
   0x7   : > { %s29_s14 = sadd.s32 1, %s929_s10  ;;  %s38_s15 = sadd.s32 1, %s921_s8 }
   0x8   : > { %p31_p0 = scmp.ge.s32.totalorder %s29_s14, 2  ;;  %p45_p1 = scmp.ne.s32.totalorder %s921_s8, %s917_s7 }
   0x9   : > { %p46_p2 = scmp.eq.s32.totalorder %s933_s11, 0  ;;  %p51_p3 = scmp.ne.s32.totalorder %s917_s7, %s913_s6 }
   0xa   : > { %s1263_s14 = smov (%p31_p0, %s29_s14), 0  ;;  %p52_p5 = scmp.eq.s32.totalorder %s644_s12, 0 }
   0xb   : > { %p992_p4 = por %p46_p2, %p45_p1  ;;  %s33_s17 = ssub.s32 %s929_s10, %s1263_s14 }
   0xc   : > { %p77_p6 = scmp.eq.s32.totalorder %s644_s12, 1  ;;  %p36_p7 = scmp.eq.s32.totalorder %s33_s17, 0 }
   0xd   : > { %p998_p8 = por %p52_p5, %p51_p3  ;;  %p83_p10 = scmp.eq.s32.totalorder %s645_s13, 1 }
   0xe   : > { %p1002_p9 = por %p77_p6, %p45_p1  ;;  %p771_p13 = scmp.lt.s32.totalorder %s933_s11, 2 }
   0xf   : > { %s1007_s20 = scalar_select %p36_p7, %s921_s8, %s38_s15  }
  0x10   : > { %p1009_p11 = por %p83_p10, %p51_p3  ;;  %s103_s22 = sand.u32 1, %s921_s8  }
  0x11   : > { %s648_s23 = sshll.u32 %s103_s22, 10  ;;  %s757_s24 = sshll.u32 %s929_s10, 14 }
  0x12   : > { %s116_s27 = scalar_lea.hbm %s1249_s0, %s757_s24  ;;  %s107_s28 = scalar_lea.vmem [#allocation2], %s648_s23 }
  0x13   : > { %s117_s29 = sshll.u32 %s107_s28, 4  ;;  %p1022_p0 = pnand %p771_p13, %p992_p4  ;;  %s118_s29 = int_to_ptr.vmem [resolvable:$true] %s117_s29 }
  0x14   : > { %p652_p1 = scmp.ge.s32.totalorder %s933_s11, 1  ;;  %s104_s2 = scalar_lea.sflag [#allocation3], %s103_s22 }
  0x15   : > { %p827_p2 = pneg %p1022_p0  ;;  %s838_s3 = scalar_lea.vmem %s118_s29, 16384 }
  0x16   : > { %p839_p3 = scmp.ne.s32.totalorder %s118_s29, %s838_s3  ;;  %s935_s4 = smov [#allocation2]  }
  0x17   : > { %s843_s5 = sshll.u32 %s935_s4, 4  ;;  %s844_s5 = int_to_ptr.vmem [resolvable:$false] %s843_s5 }
  0x18   : > { %p841_p5 = pnand %p839_p3, %p827_p2  ;;  %s845_s12 = scalar_lea.vmem %s844_s5, 32768 }
  0x19   : > { %p846_p7 = scmp.lt.s32.totalorder %s118_s29, %s844_s5  ;;  %p847_p10 = scmp.lt.s32.totalorder %s845_s12, %s838_s3 }
  0x1a   : > { %p842_p6 = pneg %p841_p5 }
  0x1b   : > { %p848_p12 = por %p847_p10, %p846_p7 }
  0x1d   : > { %p849_p4 = pnand %p848_p12, %p842_p6 }
  0x1f   : > { %852 = shalt.err (!%p849_p4)
}
  0x20   : > { %s936_s13 = smov 256   ;;  %s937_s15 = smov 16  }
  0x21   : > { %766 = dma.hbm_to_vmem [thread:$0]  (!%p1022_p0), %s116_s27, 16384, %s118_s29, %s104_s2, %s936_s13, %s936_s13, %s937_s15  }
  0x22   : > { %p125_p13 = scmp.lt.s32.totalorder %s933_s11, 3 }
  0x24   : > { %p126_p2 = pnand %p652_p1, %p125_p13 }
  0x25   : > { %s1035_s16 = sand.u32 (!%p126_p2), 1, %s917_s7  }
  0x26   : > { %129 = sbr.rel (%p126_p2) target bundleno = 113 (0x71), region = 24  ;;  %s653_s17 = sshll.u32 (!%p126_p2), %s1035_s16, 10 }
  0x27   : > { %s132_s22 = scalar_lea.sflag (!%p126_p2), [#allocation3], %s1035_s16  ;;  %s1039_s23 = scalar_lea.vmem (!%p126_p2), [#allocation2], %s653_s17 }
  0x2b   : > { %904 = dma.done.wait (%p998_p8), %s132_s22, 16384  }
  0x2c   : > { %906 = vsyncadd (%p998_p8), %s132_s22, 4294950912  ;;  %v156_v0 = vld [vmem:[%s1039_s23] sm:$0xff]  ;;  %v157_v1 = vld [vmem:[%s1039_s23 + $0x8] sm:$0xff]  ;;  %s654_s18 = sshll.u32 %s1035_s16, 6  ;;  %s758_s25 = sshll.u32 %s925_s9, 10 }
  0x2d   : > { %v655_v2 = vld [vmem:[%s1039_s23 + $0x10] sm:$0xff]  ;;  %v656_v3 = vld [vmem:[%s1039_s23 + $0x18] sm:$0xff]  ;;  %v687_v5 = vld [vmem:[%s1039_s23 + $0x20] sm:$0xff]  ;;  %s1087_s24 = scalar_lea.vmem [#allocation5], %s654_s18  ;;  %s1197_s29 = scalar_lea.hbm %s1250_s1, %s758_s25 }
  0x2e   : > { %v221_v4 = vmax.f32 %v156_v0, %v655_v2  ;;  %v688_v6 = vld [vmem:[%s1039_s23 + $0x28] sm:$0xff]  ;;  %v222_v7 = vmax.f32 %v157_v1, %v656_v3  ;;  %v719_v8 = vld [vmem:[%s1039_s23 + $0x30] sm:$0xff]  ;;  %v720_v9 = vld [vmem:[%s1039_s23 + $0x38] sm:$0xff]  ;;  %s558_s26 = sshll.u32 %s1087_s24, 4  ;;  %s544_s30 = scalar_lea.sflag [#allocation4], %s1035_s16  ;;  %s1199_s26 = int_to_ptr.vmem [resolvable:$true] %s558_s26 }
  0x2f   : > { %v158_v10 = vld [vmem:[%s1039_s23 + $0x40] sm:$0xff]  ;;  %v319_v11 = vmax.f32 %v687_v5, %v719_v8  ;;  %v320_v12 = vmax.f32 %v688_v6, %v720_v9  ;;  %v159_v13 = vld [vmem:[%s1039_s23 + $0x48] sm:$0xff]  ;;  %v657_v14 = vld [vmem:[%s1039_s23 + $0x50] sm:$0xff]  ;;  %s853_s9 = scalar_lea.vmem %s1199_s26, 1024  ;;  %s938_s2 = smov [#allocation5]  }
  0x30   : > { %v658_v15 = vld [vmem:[%s1039_s23 + $0x58] sm:$0xff]  ;;  %v223_v16 = vmax.f32 %v158_v10, %v657_v14  ;;  %v689_v18 = vld [vmem:[%s1039_s23 + $0x60] sm:$0xff]  ;;  %v690_v19 = vld [vmem:[%s1039_s23 + $0x68] sm:$0xff]  ;;  %p854_p8 = scmp.ne.s32.totalorder %s1199_s26, %s853_s9  ;;  %s857_s3 = sshll.u32 %s938_s2, 4  ;;  %s858_s3 = int_to_ptr.vmem [resolvable:$false] %s857_s3 }
  0x31   : > { %v224_v17 = vmax.f32 %v159_v13, %v658_v15  ;;  %v721_v20 = vld [vmem:[%s1039_s23 + $0x70] sm:$0xff]  ;;  %v351_v21 = vmax.f32 %v221_v4, %v319_v11  ;;  %v352_v22 = vmax.f32 %v222_v7, %v320_v12  ;;  %v722_v23 = vld [vmem:[%s1039_s23 + $0x78] sm:$0xff]  ;;  %v160_v25 = vld [vmem:[%s1039_s23 + $0x80] sm:$0xff]  ;;  %s859_s4 = scalar_lea.vmem %s858_s3, 2048  ;;  %p860_p1 = scmp.lt.s32.totalorder %s1199_s26, %s858_s3 }
  0x32   : > { %v321_v24 = vmax.f32 %v689_v18, %v721_v20  ;;  %v161_v26 = vld [vmem:[%s1039_s23 + $0x88] sm:$0xff]  ;;  %v322_v27 = vmax.f32 %v690_v19, %v722_v23  ;;  %v659_v28 = vld [vmem:[%s1039_s23 + $0x90] sm:$0xff]  ;;  %v660_v29 = vld [vmem:[%s1039_s23 + $0x98] sm:$0xff]  ;;  %p855_p12 = pnand %p854_p8, %p1002_p9  ;;  %p861_p3 = scmp.lt.s32.totalorder %s859_s4, %s853_s9 }
  0x33   : > { %v691_v30 = vld [vmem:[%s1039_s23 + $0xa0] sm:$0xff]  ;;  %v399_v31 = vrot.slane %v351_v21, 4  ;;  %v463_v32 = vrot.slane %v352_v22, 4  ;;  %v225_v34 = vmax.f32 %v160_v25, %v659_v28  ;;  %v692_v35 = vld [vmem:[%s1039_s23 + $0xa8] sm:$0xff]  ;;  %v723_v36 = vld [vmem:[%s1039_s23 + $0xb0] sm:$0xff]  ;;  %v226_v39 = vmax.f32 %v161_v26, %v660_v29 }
  0x34   : > { %v353_v33 = vmax.f32 %v223_v16, %v321_v24  ;;  %v724_v37 = vld [vmem:[%s1039_s23 + $0xb8] sm:$0xff]  ;;  %v354_v38 = vmax.f32 %v224_v17, %v322_v27  ;;  %v323_v40 = vmax.f32 %v691_v30, %v723_v36  ;;  %v162_v42 = vld [vmem:[%s1039_s23 + $0xc0] sm:$0xff]  ;;  %v163_v43 = vld [vmem:[%s1039_s23 + $0xc8] sm:$0xff]  ;;  %p856_p0 = pneg %p855_p12  ;;  %p862_p5 = por %p861_p3, %p860_p1 }
  0x35   : > { %v324_v41 = vmax.f32 %v692_v35, %v724_v37  ;;  %v661_v44 = vld [vmem:[%s1039_s23 + $0xd0] sm:$0xff]  ;;  %v431_v45 = vmax.f32 %v351_v21, %v399_v31  ;;  %v495_v46 = vmax.f32 %v352_v22, %v463_v32  ;;  %v662_v48 = vld [vmem:[%s1039_s23 + $0xd8] sm:$0xff]  ;;  %v693_v50 = vld [vmem:[%s1039_s23 + $0xe0] sm:$0xff] }
  0x36   : > { %v400_v47 = vrot.slane %v353_v33, 4  ;;  %v227_v49 = vmax.f32 %v162_v42, %v661_v44  ;;  %v694_v51 = vld [vmem:[%s1039_s23 + $0xe8] sm:$0xff]  ;;  %v464_v52 = vrot.slane %v354_v38, 4  ;;  %v355_v53 = vmax.f32 %v225_v34, %v323_v40  ;;  %v725_v56 = vld [vmem:[%s1039_s23 + $0xf0] sm:$0xff]  ;;  %v726_v57 = vld [vmem:[%s1039_s23 + $0xf8] sm:$0xff]  ;;  %p863_p6 = pnand %p862_p5, %p856_p0 }
  0x37   : > { %v356_v54 = vmax.f32 %v226_v39, %v324_v41  ;;  %v228_v55 = vmax.f32 %v163_v43, %v662_v48  ;;  %v164_v58 = vld [vmem:[%s1039_s23 + $0x100] sm:$0xff]  ;;  %v511_v59 = vmax.f32 %v431_v45, %v495_v46  ;;  %v325_v61 = vmax.f32 %v693_v50, %v725_v56  ;;  %v165_v63 = vld [vmem:[%s1039_s23 + $0x108] sm:$0xff]  ;;  %v663_v0 = vld [vmem:[%s1039_s23 + $0x110] sm:$0xff] }
  0x38   : > { %v432_v60 = vmax.f32 %v353_v33, %v400_v47  ;;  %v326_v62 = vmax.f32 %v694_v51, %v726_v57  ;;  %v664_v1 = vld [vmem:[%s1039_s23 + $0x118] sm:$0xff]  ;;  %v496_v2 = vmax.f32 %v354_v38, %v464_v52  ;;  %v401_v3 = vrot.slane %v355_v53, 4  ;;  %v695_v6 = vld [vmem:[%s1039_s23 + $0x120] sm:$0xff]  ;;  %v696_v7 = vld [vmem:[%s1039_s23 + $0x128] sm:$0xff] }
  0x39   : > { %v465_v4 = vrot.slane %v356_v54, 4  ;;  %v229_v5 = vmax.f32 %v164_v58, %v663_v0  ;;  %v727_v8 = vld [vmem:[%s1039_s23 + $0x130] sm:$0xff]  ;;  %527 = vst [vmem:[%s1087_s24] sm:$0xf] %v511_v59  ;;  %v357_v9 = vmax.f32 %v227_v49, %v325_v61  ;;  %v230_v11 = vmax.f32 %v165_v63, %v664_v1  ;;  %v728_v12 = vld [vmem:[%s1039_s23 + $0x138] sm:$0xff]  ;;  %v166_v14 = vld [vmem:[%s1039_s23 + $0x140] sm:$0xff] }
  0x3a   : > { %v358_v10 = vmax.f32 %v228_v55, %v326_v62  ;;  %v327_v13 = vmax.f32 %v695_v6, %v727_v8  ;;  %v167_v15 = vld [vmem:[%s1039_s23 + $0x148] sm:$0xff]  ;;  %v512_v16 = vmax.f32 %v432_v60, %v496_v2  ;;  %v433_v17 = vmax.f32 %v355_v53, %v401_v3  ;;  %v665_v20 = vld [vmem:[%s1039_s23 + $0x150] sm:$0xff]  ;;  %v666_v21 = vld [vmem:[%s1039_s23 + $0x158] sm:$0xff] }
  0x3b   : > { %v497_v18 = vmax.f32 %v356_v54, %v465_v4  ;;  %v328_v19 = vmax.f32 %v696_v7, %v728_v12  ;;  %v697_v22 = vld [vmem:[%s1039_s23 + $0x160] sm:$0xff]  ;;  %v402_v23 = vrot.slane %v357_v9, 4  ;;  %v231_v26 = vmax.f32 %v166_v14, %v665_v20  ;;  %v698_v27 = vld [vmem:[%s1039_s23 + $0x168] sm:$0xff]  ;;  %v729_v28 = vld [vmem:[%s1039_s23 + $0x170] sm:$0xff] }
  0x3c   : > { %v466_v24 = vrot.slane %v358_v10, 4  ;;  %v359_v25 = vmax.f32 %v229_v5, %v327_v13  ;;  %v730_v29 = vld [vmem:[%s1039_s23 + $0x178] sm:$0xff]  ;;  %528 = vst [vmem:[%s1087_s24 + $0x4] sm:$0xf] %v512_v16  ;;  %v232_v32 = vmax.f32 %v167_v15, %v666_v21  ;;  %v329_v33 = vmax.f32 %v697_v22, %v729_v28  ;;  %v168_v34 = vld [vmem:[%s1039_s23 + $0x180] sm:$0xff]  ;;  %v169_v35 = vld [vmem:[%s1039_s23 + $0x188] sm:$0xff] }
  0x3d   : > { %v513_v30 = vmax.f32 %v433_v17, %v497_v18  ;;  %v360_v31 = vmax.f32 %v230_v11, %v328_v19  ;;  %v667_v36 = vld [vmem:[%s1039_s23 + $0x190] sm:$0xff]  ;;  %v434_v37 = vmax.f32 %v357_v9, %v402_v23  ;;  %v330_v40 = vmax.f32 %v698_v27, %v730_v29  ;;  %v668_v41 = vld [vmem:[%s1039_s23 + $0x198] sm:$0xff]  ;;  %v699_v42 = vld [vmem:[%s1039_s23 + $0x1a0] sm:$0xff] }
  0x3e   : > { %v498_v38 = vmax.f32 %v358_v10, %v466_v24  ;;  %v403_v39 = vrot.slane %v359_v25, 4  ;;  %v700_v43 = vld [vmem:[%s1039_s23 + $0x1a8] sm:$0xff]  ;;  %v361_v45 = vmax.f32 %v231_v26, %v329_v33  ;;  %v233_v46 = vmax.f32 %v168_v34, %v667_v36  ;;  %v731_v48 = vld [vmem:[%s1039_s23 + $0x1b0] sm:$0xff]  ;;  %v732_v49 = vld [vmem:[%s1039_s23 + $0x1b8] sm:$0xff] }
  0x3f   : > { %529 = vst [vmem:[%s1087_s24 + $0x8] sm:$0xf] %v513_v30  ;;  %v467_v44 = vrot.slane %v360_v31, 4  ;;  %v234_v47 = vmax.f32 %v169_v35, %v668_v41  ;;  %v170_v50 = vld [vmem:[%s1039_s23 + $0x1c0] sm:$0xff]  ;;  %v362_v53 = vmax.f32 %v232_v32, %v330_v40  ;;  %v331_v54 = vmax.f32 %v699_v42, %v731_v48  ;;  %v171_v55 = vld [vmem:[%s1039_s23 + $0x1c8] sm:$0xff]  ;;  %v669_v56 = vld [vmem:[%s1039_s23 + $0x1d0] sm:$0xff] }
  0x40   : > { %v514_v51 = vmax.f32 %v434_v37, %v498_v38  ;;  %v435_v52 = vmax.f32 %v359_v25, %v403_v39  ;;  %v670_v57 = vld [vmem:[%s1039_s23 + $0x1d8] sm:$0xff]  ;;  %v404_v59 = vrot.slane %v361_v45, 4  ;;  %v332_v60 = vmax.f32 %v700_v43, %v732_v49  ;;  %v701_v62 = vld [vmem:[%s1039_s23 + $0x1e0] sm:$0xff]  ;;  %v702_v63 = vld [vmem:[%s1039_s23 + $0x1e8] sm:$0xff] }
  0x41   : > { %v499_v58 = vmax.f32 %v360_v31, %v467_v44  ;;  %v235_v61 = vmax.f32 %v170_v50, %v669_v56  ;;  %v733_v0 = vld [vmem:[%s1039_s23 + $0x1f0] sm:$0xff]  ;;  %v468_v1 = vrot.slane %v362_v53, 4  ;;  %v363_v2 = vmax.f32 %v233_v46, %v331_v54  ;;  %v734_v4 = vld [vmem:[%s1039_s23 + $0x1f8] sm:$0xff]  ;;  %v172_v6 = vld [vmem:[%s1039_s23 + $0x200] sm:$0xff] }
  0x42   : > { %530 = vst [vmem:[%s1087_s24 + $0xc] sm:$0xf] %v514_v51  ;;  %v236_v3 = vmax.f32 %v171_v55, %v670_v57  ;;  %v333_v5 = vmax.f32 %v701_v62, %v733_v0  ;;  %v173_v7 = vld [vmem:[%s1039_s23 + $0x208] sm:$0xff]  ;;  %v436_v9 = vmax.f32 %v361_v45, %v404_v59  ;;  %v364_v10 = vmax.f32 %v234_v47, %v332_v60  ;;  %v671_v12 = vld [vmem:[%s1039_s23 + $0x210] sm:$0xff]  ;;  %v672_v13 = vld [vmem:[%s1039_s23 + $0x218] sm:$0xff] }
  0x43   : > { %v515_v8 = vmax.f32 %v435_v52, %v499_v58  ;;  %v334_v11 = vmax.f32 %v702_v63, %v734_v4  ;;  %v703_v14 = vld [vmem:[%s1039_s23 + $0x220] sm:$0xff]  ;;  %v500_v15 = vmax.f32 %v362_v53, %v468_v1  ;;  %v405_v16 = vrot.slane %v363_v2, 4  ;;  %v704_v19 = vld [vmem:[%s1039_s23 + $0x228] sm:$0xff]  ;;  %v735_v20 = vld [vmem:[%s1039_s23 + $0x230] sm:$0xff] }
  0x44   : > { %v365_v17 = vmax.f32 %v235_v61, %v333_v5  ;;  %v237_v18 = vmax.f32 %v172_v6, %v671_v12  ;;  %v736_v21 = vld [vmem:[%s1039_s23 + $0x238] sm:$0xff]  ;;  %v469_v22 = vrot.slane %v364_v10, 4  ;;  %v238_v24 = vmax.f32 %v173_v7, %v672_v13  ;;  %v174_v26 = vld [vmem:[%s1039_s23 + $0x240] sm:$0xff]  ;;  %v175_v27 = vld [vmem:[%s1039_s23 + $0x248] sm:$0xff] }
  0x45   : > { %531 = vst [vmem:[%s1087_s24 + $0x10] sm:$0xf] %v515_v8  ;;  %v366_v23 = vmax.f32 %v236_v3, %v334_v11  ;;  %v335_v25 = vmax.f32 %v703_v14, %v735_v20  ;;  %v673_v28 = vld [vmem:[%s1039_s23 + $0x250] sm:$0xff]  ;;  %v516_v29 = vmax.f32 %v436_v9, %v500_v15  ;;  %v437_v30 = vmax.f32 %v363_v2, %v405_v16  ;;  %v674_v33 = vld [vmem:[%s1039_s23 + $0x258] sm:$0xff]  ;;  %v705_v34 = vld [vmem:[%s1039_s23 + $0x260] sm:$0xff] }
  0x46   : > { %v406_v31 = vrot.slane %v365_v17, 4  ;;  %v336_v32 = vmax.f32 %v704_v19, %v736_v21  ;;  %v706_v35 = vld [vmem:[%s1039_s23 + $0x268] sm:$0xff]  ;;  %v501_v36 = vmax.f32 %v364_v10, %v469_v22  ;;  %v239_v39 = vmax.f32 %v174_v26, %v673_v28  ;;  %v737_v40 = vld [vmem:[%s1039_s23 + $0x270] sm:$0xff]  ;;  %v738_v41 = vld [vmem:[%s1039_s23 + $0x278] sm:$0xff] }
  0x47   : > { %v470_v37 = vrot.slane %v366_v23, 4  ;;  %v367_v38 = vmax.f32 %v237_v18, %v335_v25  ;;  %v176_v42 = vld [vmem:[%s1039_s23 + $0x280] sm:$0xff]  ;;  %532 = vst [vmem:[%s1087_s24 + $0x14] sm:$0xf] %v516_v29  ;;  %v240_v45 = vmax.f32 %v175_v27, %v674_v33  ;;  %v337_v46 = vmax.f32 %v705_v34, %v737_v40  ;;  %v177_v47 = vld [vmem:[%s1039_s23 + $0x288] sm:$0xff]  ;;  %v675_v48 = vld [vmem:[%s1039_s23 + $0x290] sm:$0xff] }
  0x48   : > { %v438_v43 = vmax.f32 %v365_v17, %v406_v31  ;;  %v368_v44 = vmax.f32 %v238_v24, %v336_v32  ;;  %v676_v49 = vld [vmem:[%s1039_s23 + $0x298] sm:$0xff]  ;;  %v517_v50 = vmax.f32 %v437_v30, %v501_v36  ;;  %v338_v53 = vmax.f32 %v706_v35, %v738_v41  ;;  %v707_v54 = vld [vmem:[%s1039_s23 + $0x2a0] sm:$0xff]  ;;  %v708_v55 = vld [vmem:[%s1039_s23 + $0x2a8] sm:$0xff] }
  0x49   : > { %v502_v51 = vmax.f32 %v366_v23, %v470_v37  ;;  %v407_v52 = vrot.slane %v367_v38, 4  ;;  %v739_v56 = vld [vmem:[%s1039_s23 + $0x2b0] sm:$0xff]  ;;  %v369_v58 = vmax.f32 %v239_v39, %v337_v46  ;;  %v241_v59 = vmax.f32 %v176_v42, %v675_v48  ;;  %v740_v61 = vld [vmem:[%s1039_s23 + $0x2b8] sm:$0xff]  ;;  %v178_v62 = vld [vmem:[%s1039_s23 + $0x2c0] sm:$0xff] }
  0x4a   : > { %v471_v57 = vrot.slane %v368_v44, 4  ;;  %v242_v60 = vmax.f32 %v177_v47, %v676_v49  ;;  %v179_v63 = vld [vmem:[%s1039_s23 + $0x2c8] sm:$0xff]  ;;  %533 = vst [vmem:[%s1087_s24 + $0x18] sm:$0xf] %v517_v50  ;;  %v370_v2 = vmax.f32 %v240_v45, %v338_v53  ;;  %v339_v3 = vmax.f32 %v707_v54, %v739_v56  ;;  %v677_v4 = vld [vmem:[%s1039_s23 + $0x2d0] sm:$0xff]  ;;  %v678_v5 = vld [vmem:[%s1039_s23 + $0x2d8] sm:$0xff] }
  0x4b   : > { %v518_v0 = vmax.f32 %v438_v43, %v502_v51  ;;  %v439_v1 = vmax.f32 %v367_v38, %v407_v52  ;;  %v709_v6 = vld [vmem:[%s1039_s23 + $0x2e0] sm:$0xff]  ;;  %v408_v8 = vrot.slane %v369_v58, 4  ;;  %v340_v9 = vmax.f32 %v708_v55, %v740_v61  ;;  %v710_v11 = vld [vmem:[%s1039_s23 + $0x2e8] sm:$0xff]  ;;  %v741_v12 = vld [vmem:[%s1039_s23 + $0x2f0] sm:$0xff] }
  0x4c   : > { %v503_v7 = vmax.f32 %v368_v44, %v471_v57  ;;  %v243_v10 = vmax.f32 %v178_v62, %v677_v4  ;;  %v742_v13 = vld [vmem:[%s1039_s23 + $0x2f8] sm:$0xff]  ;;  %v472_v14 = vrot.slane %v370_v2, 4  ;;  %v371_v15 = vmax.f32 %v241_v59, %v339_v3  ;;  %v180_v18 = vld [vmem:[%s1039_s23 + $0x300] sm:$0xff]  ;;  %v181_v19 = vld [vmem:[%s1039_s23 + $0x308] sm:$0xff] }
  0x4d   : > { %534 = vst [vmem:[%s1087_s24 + $0x1c] sm:$0xf] %v518_v0  ;;  %v244_v16 = vmax.f32 %v179_v63, %v678_v5  ;;  %v341_v17 = vmax.f32 %v709_v6, %v741_v12  ;;  %v679_v20 = vld [vmem:[%s1039_s23 + $0x310] sm:$0xff]  ;;  %v440_v22 = vmax.f32 %v369_v58, %v408_v8  ;;  %v372_v23 = vmax.f32 %v242_v60, %v340_v9  ;;  %v680_v25 = vld [vmem:[%s1039_s23 + $0x318] sm:$0xff]  ;;  %v711_v26 = vld [vmem:[%s1039_s23 + $0x320] sm:$0xff] }
  0x4e   : > { %v519_v21 = vmax.f32 %v439_v1, %v503_v7  ;;  %v342_v24 = vmax.f32 %v710_v11, %v742_v13  ;;  %v712_v27 = vld [vmem:[%s1039_s23 + $0x328] sm:$0xff]  ;;  %v504_v28 = vmax.f32 %v370_v2, %v472_v14  ;;  %v409_v29 = vrot.slane %v371_v15, 4  ;;  %v743_v32 = vld [vmem:[%s1039_s23 + $0x330] sm:$0xff]  ;;  %v744_v33 = vld [vmem:[%s1039_s23 + $0x338] sm:$0xff] }
  0x4f   : > { %v373_v30 = vmax.f32 %v243_v10, %v341_v17  ;;  %v245_v31 = vmax.f32 %v180_v18, %v679_v20  ;;  %v182_v34 = vld [vmem:[%s1039_s23 + $0x340] sm:$0xff]  ;;  %v473_v35 = vrot.slane %v372_v23, 4  ;;  %v246_v37 = vmax.f32 %v181_v19, %v680_v25  ;;  %v183_v39 = vld [vmem:[%s1039_s23 + $0x348] sm:$0xff]  ;;  %v681_v40 = vld [vmem:[%s1039_s23 + $0x350] sm:$0xff] }
  0x50   : > { %535 = vst [vmem:[%s1087_s24 + $0x20] sm:$0xf] %v519_v21  ;;  %v374_v36 = vmax.f32 %v244_v16, %v342_v24  ;;  %v343_v38 = vmax.f32 %v711_v26, %v743_v32  ;;  %v682_v41 = vld [vmem:[%s1039_s23 + $0x358] sm:$0xff]  ;;  %v520_v42 = vmax.f32 %v440_v22, %v504_v28  ;;  %v441_v43 = vmax.f32 %v371_v15, %v409_v29  ;;  %v713_v46 = vld [vmem:[%s1039_s23 + $0x360] sm:$0xff]  ;;  %v714_v47 = vld [vmem:[%s1039_s23 + $0x368] sm:$0xff] }
  0x51   : > { %v410_v44 = vrot.slane %v373_v30, 4  ;;  %v344_v45 = vmax.f32 %v712_v27, %v744_v33  ;;  %v745_v48 = vld [vmem:[%s1039_s23 + $0x370] sm:$0xff]  ;;  %v505_v49 = vmax.f32 %v372_v23, %v473_v35  ;;  %v247_v52 = vmax.f32 %v182_v34, %v681_v40  ;;  %v746_v53 = vld [vmem:[%s1039_s23 + $0x378] sm:$0xff]  ;;  %v184_v54 = vld [vmem:[%s1039_s23 + $0x380] sm:$0xff] }
  0x52   : > { %v474_v50 = vrot.slane %v374_v36, 4  ;;  %v375_v51 = vmax.f32 %v245_v31, %v343_v38  ;;  %v185_v55 = vld [vmem:[%s1039_s23 + $0x388] sm:$0xff]  ;;  %536 = vst [vmem:[%s1087_s24 + $0x24] sm:$0xf] %v520_v42  ;;  %v248_v58 = vmax.f32 %v183_v39, %v682_v41  ;;  %v345_v59 = vmax.f32 %v713_v46, %v745_v48  ;;  %v683_v60 = vld [vmem:[%s1039_s23 + $0x390] sm:$0xff]  ;;  %v684_v61 = vld [vmem:[%s1039_s23 + $0x398] sm:$0xff] }
  0x53   : > { %v442_v56 = vmax.f32 %v373_v30, %v410_v44  ;;  %v376_v57 = vmax.f32 %v246_v37, %v344_v45  ;;  %v715_v62 = vld [vmem:[%s1039_s23 + $0x3a0] sm:$0xff]  ;;  %v521_v63 = vmax.f32 %v441_v43, %v505_v49  ;;  %v346_v2 = vmax.f32 %v714_v47, %v746_v53  ;;  %v716_v3 = vld [vmem:[%s1039_s23 + $0x3a8] sm:$0xff]  ;;  %v747_v4 = vld [vmem:[%s1039_s23 + $0x3b0] sm:$0xff] }
  0x54   : > { %v506_v0 = vmax.f32 %v374_v36, %v474_v50  ;;  %v411_v1 = vrot.slane %v375_v51, 4  ;;  %v748_v5 = vld [vmem:[%s1039_s23 + $0x3b8] sm:$0xff]  ;;  %v377_v7 = vmax.f32 %v247_v52, %v345_v59  ;;  %v249_v8 = vmax.f32 %v184_v54, %v683_v60  ;;  %v186_v10 = vld [vmem:[%s1039_s23 + $0x3c0] sm:$0xff]  ;;  %v187_v11 = vld [vmem:[%s1039_s23 + $0x3c8] sm:$0xff] }
  0x55   : > { %v475_v6 = vrot.slane %v376_v57, 4  ;;  %v250_v9 = vmax.f32 %v185_v55, %v684_v61  ;;  %v685_v12 = vld [vmem:[%s1039_s23 + $0x3d0] sm:$0xff]  ;;  %537 = vst [vmem:[%s1087_s24 + $0x28] sm:$0xf] %v521_v63  ;;  %v378_v15 = vmax.f32 %v248_v58, %v346_v2  ;;  %v347_v16 = vmax.f32 %v715_v62, %v747_v4  ;;  %v686_v17 = vld [vmem:[%s1039_s23 + $0x3d8] sm:$0xff]  ;;  %v717_v18 = vld [vmem:[%s1039_s23 + $0x3e0] sm:$0xff] }
  0x56   : > { %v522_v13 = vmax.f32 %v442_v56, %v506_v0  ;;  %v443_v14 = vmax.f32 %v375_v51, %v411_v1  ;;  %v718_v19 = vld [vmem:[%s1039_s23 + $0x3e8] sm:$0xff]  ;;  %v412_v21 = vrot.slane %v377_v7, 4  ;;  %v348_v22 = vmax.f32 %v716_v3, %v748_v5  ;;  %v749_v24 = vld [vmem:[%s1039_s23 + $0x3f0] sm:$0xff]  ;;  %v750_v25 = vld [vmem:[%s1039_s23 + $0x3f8] sm:$0xff] }
  0x57   : > { %v507_v20 = vmax.f32 %v376_v57, %v475_v6  ;;  %v251_v23 = vmax.f32 %v186_v10, %v685_v12  ;;  %v476_v26 = vrot.slane %v378_v15, 4  ;;  %v379_v27 = vmax.f32 %v249_v8, %v347_v16 }
  0x58   : > { %538 = vst [vmem:[%s1087_s24 + $0x2c] sm:$0xf] %v522_v13  ;;  %v252_v28 = vmax.f32 %v187_v11, %v686_v17  ;;  %v349_v29 = vmax.f32 %v717_v18, %v749_v24  ;;  %v444_v31 = vmax.f32 %v377_v7, %v412_v21  ;;  %v380_v32 = vmax.f32 %v250_v9, %v348_v22 }
  0x59   : > { %v523_v30 = vmax.f32 %v443_v14, %v507_v20  ;;  %v350_v33 = vmax.f32 %v718_v19, %v750_v25  ;;  %v508_v34 = vmax.f32 %v378_v15, %v476_v26  ;;  %v413_v35 = vrot.slane %v379_v27, 4 }
  0x5a   : > { %v381_v36 = vmax.f32 %v251_v23, %v349_v29  ;;  %v477_v37 = vrot.slane %v380_v32, 4 }
  0x5b   : > { %539 = vst [vmem:[%s1087_s24 + $0x30] sm:$0xf] %v523_v30  ;;  %v382_v38 = vmax.f32 %v252_v28, %v350_v33  ;;  %v524_v39 = vmax.f32 %v444_v31, %v508_v34  ;;  %v445_v40 = vmax.f32 %v379_v27, %v413_v35 }
  0x5c   : > { %v414_v41 = vrot.slane %v381_v36, 4  ;;  %v509_v42 = vmax.f32 %v380_v32, %v477_v37 }
  0x5d   : > { %v478_v43 = vrot.slane %v382_v38, 4  ;;  %540 = vst [vmem:[%s1087_s24 + $0x34] sm:$0xf] %v524_v39 }
  0x5e   : > { %v446_v44 = vmax.f32 %v381_v36, %v414_v41  ;;  %v525_v45 = vmax.f32 %v445_v40, %v509_v42 }
  0x5f   : > { %v510_v46 = vmax.f32 %v382_v38, %v478_v43 }
  0x60   : > { %541 = vst [vmem:[%s1087_s24 + $0x38] sm:$0xf] %v525_v45 }
  0x61   : > { %v526_v47 = vmax.f32 %v446_v44, %v510_v46 }
  0x63   : > { %542 = vst [vmem:[%s1087_s24 + $0x3c] sm:$0xf] %v526_v47 }
  0x64   : > { %866 = shalt.err (!%p863_p6)
}
  0x65   : > { %s867_s5 = scalar_lea.hbm %s1197_s29, 1024  ;;  %s871_s15 = scalar_lea.hbm %s1250_s1, 2048 }
  0x66   : > { %p868_p7 = scmp.ne.s32.totalorder %s1197_s29, %s867_s5  ;;  %p872_p13 = scmp.lt.s32.totalorder %s1197_s29, %s1250_s1 }
  0x67   : > { %p873_p2 = scmp.lt.s32.totalorder %s871_s15, %s867_s5 }
  0x68   : > { %p869_p10 = pnand %p868_p7, %p1002_p9 }
  0x69   : > { %p874_p8 = por %p873_p2, %p872_p13 }
  0x6a   : > { %p870_p4 = pneg %p869_p10 }
  0x6c   : > { %p875_p12 = pnand %p874_p8, %p870_p4 }
  0x6e   : > { %878 = shalt.err (!%p875_p12)
}
  0x6f   : > { %s939_s23 = smov 64   ;;  %s940_s18 = smov 4  }
  0x70   : > { %761 = dma.vmem_to_hbm [thread:$0]  (%p1002_p9), %s1199_s26, 1024, %s1197_s29, %s544_s30, %s939_s23, %s939_s23, %s940_s18  }
  0x71 PF: > { %s573_s24 = sand.u32 1, %s913_s6   ;;  %p1256_p0 = scmp.ge.s32.totalorder %s933_s11, 2 }
  0x72   : > { %s574_s25 = scalar_lea.sflag [#allocation4], %s573_s24 }
  0x73   : > { %p768_p1 = pnand %p1256_p0, %p1009_p11 }
  0x75   : > { %p769_p3 = pneg %p768_p1 }
  0x77   : > { %908 = dma.done.wait (%p769_p3), %s574_s25, 1024  }
  0x78   : > { %910 = vsyncadd (%p769_p3), %s574_s25, 4294966272  ;;  %s17_s11 = sadd.s32 1, %s933_s11   ;;  %s1257_s6 = smov %s917_s7 }
  0x79   : > { %p14_p5 = scmp.ge.s32.totalorder %s17_s11, 4   ;;  %s1258_s7 = smov %s921_s8 }
  0x7a   : > { %s1259_s8 = smov %s1007_s20  ;;  %s1260_s9 = smov %s929_s10 }
  0x7b   : > { %s1261_s10 = smov %s1263_s14  ;;  %16 = sbr.rel (!%p14_p5) target bundleno = 6 (0x6), region = 72 }
  0x80   :  { %579 = vsyncpa [#allocation3], 1 }
  0x81   :  { %581 = vsyncpa [#allocation3 + $0x1], 1 }
  0x82   :  { %582 = vsyncpa [#allocation4], 1 }
  0x83   :  { %584 = vsyncpa [#allocation4 + $0x1], 1 }

</bundles_post_ra>
